<compile_context>
chip_gen: v7x
topology: tpu7x:2x2x1
jax: 0.10.0
libtpu: 0.0.40
codegen_flags: <defaults>
</compile_context>

<pallas_src>
import jax
import jax.numpy as jnp
from jax.experimental import pallas as pl
from jax.experimental.pallas import tpu as pltpu

_LANES = 128  # TPU vreg lane width


def _sigmoid_scale_kernel(x_ref, o_ref):
    # Elementwise: out = 0.3 * sigmoid(x).  exp -> EUP, scale -> VPU.
    o_ref[...] = (0.3 * jax.nn.sigmoid(x_ref[...])).astype(o_ref.dtype)


def _sublane_multiple(dtype) -> int:
    """Sublane packing multiple for the dtype: f32 -> 8, bf16 -> 16, int8 -> 32."""
    itemsize = jnp.dtype(dtype).itemsize
    return max(8, 32 // itemsize)


def _tpu_budgets():
    """(vmem_limit_bytes, max_block_bytes), generation dependent."""
    phys = 0
    try:
        info = pltpu.get_tpu_info()
        phys = int(getattr(info, "vmem_capacity_bytes", 0))
    except Exception:
        phys = 0
    if phys >= 128 * 1024 * 1024:
        # v5e / v6e: 128 MiB physical VMEM -> allow 64 MiB scoped, 8 MiB blocks
        # (4 double-buffered streams x 8 MiB = 32 MiB, well under the limit).
        return 64 * 1024 * 1024, 8 * 1024 * 1024
    # v7x (64 MiB physical) or unknown: stay at the 32 MiB scoped default,
    # 4 MiB blocks -> 16 MiB working set.
    return 32 * 1024 * 1024, 4 * 1024 * 1024


def _largest_divisor_tile(total, cap, sub):
    """Largest multiple-of-`sub` divisor of `total` that is <= cap.

    Falls back to cap rounded down to `sub` (ragged tail is masked) if no such
    divisor exists.
    """
    cap = max(sub, (cap // sub) * sub)
    d = min(cap, (total // sub) * sub)
    while d >= sub:
        if total % d == 0:
            return d
        d -= sub
    return cap


def _ensure_min_steps(ts, total, other_steps, sub, min_steps=2):
    """Shrink ts (keeping it a multiple of `sub`) until the grid has enough steps.

    Needed so v7x's 2 TensorCores both get work at small batch sizes.
    """
    if ts <= sub:
        return ts
    while other_steps * pl.cdiv(total, ts) < min_steps:
        nts = ((ts // 2) // sub) * sub
        if nts < sub:
            break
        ts = nts
    return ts


def _compiler(ndims, vmem_limit):
    return pltpu.CompilerParams(
        dimension_semantics=("parallel",) * ndims,
        vmem_limit_bytes=vmem_limit,
    )


def sigmoid_on_last_channel(x):
    """x: [N, C, H, W] -> [N, 1, H, W], equal to 0.3 * sigmoid(x[:, -1:, :, :])."""
    N, C, H, W = x.shape
    L = H * W
    itemsize = jnp.dtype(x.dtype).itemsize
    sub = _sublane_multiple(x.dtype)
    vmem_limit, max_block_bytes = _tpu_budgets()

    if L % _LANES == 0:
        # Lane-dense path: view each channel slab as (S, 128) rows of 128 lanes.
        S = L // _LANES
        max_rows = max(sub, max_block_bytes // (_LANES * itemsize))
        if S <= max_rows:
            ts = S                                   # full dim: always legal
        else:
            ts = _largest_divisor_tile(S, max_rows, sub)
        ts = _ensure_min_steps(ts, S, N, sub, min_steps=2)
        num_s = pl.cdiv(S, ts)

        x_rows = x.reshape(N * C, S, _LANES)         # free: contiguous reshape
        out = pl.pallas_call(
            _sigmoid_scale_kernel,
            out_shape=jax.ShapeDtypeStruct((N, S, _LANES), x.dtype),
            grid=(N, num_s),
            in_specs=[
                # Select only the last channel of batch element n.
                pl.BlockSpec((1, ts, _LANES),
                             lambda n, s: (n * C + (C - 1), s, 0)),
            ],
            out_specs=pl.BlockSpec((1, ts, _LANES), lambda n, s: (n, s, 0)),
            compiler_params=_compiler(2, vmem_limit),
        )(x_rows)
        return out.reshape(N, 1, H, W)

    # Fallback (H*W not a multiple of 128): tile image rows as (1, th, W) blocks
    # so VMEM stays bounded and DMA/compute pipelines even for large images.
    # Edge lanes/rows are masked (W and/or the last row-tile may be partial).
    th_cap = max(sub, max_block_bytes // max(1, W * itemsize))
    if H <= th_cap:
        th = H                                       # full dim: always legal
    else:
        th = _largest_divisor_tile(H, th_cap, sub)
    th = _ensure_min_steps(th, H, N, sub, min_steps=2)
    num_h = pl.cdiv(H, th)

    x_rows = x.reshape(N * C, H, W)
    out = pl.pallas_call(
        _sigmoid_scale_kernel,
        out_shape=jax.ShapeDtypeStruct((N, H, W), x.dtype),
        grid=(N, num_h),
        in_specs=[pl.BlockSpec((1, th, W), lambda n, h: (n * C + (C - 1), h, 0))],
        out_specs=pl.BlockSpec((1, th, W), lambda n, h: (n, h, 0)),
        compiler_params=_compiler(2, vmem_limit),
    )(x_rows)
    return out.reshape(N, 1, H, W)


def _reference(x):
    return (0.3 * jax.nn.sigmoid(x[:, -1, :, :]))[:, None, :, :]


if __name__ == "__main__":
    key = jax.random.PRNGKey(0)

    # Lane-dense path: H*W = 256 is a multiple of 128.
    N, C, H, W = 2, 4, 16, 16
    x = jax.random.normal(key, (N, C, H, W), dtype=jnp.float32)
    out = jax.block_until_ready(sigmoid_on_last_channel(x))
    ref = _reference(x)
    assert out.shape == (N, 1, H, W), out.shape
    assert jnp.allclose(out, ref, atol=1e-6, rtol=1e-6), "lane-dense mismatch"

    # Fallback path: H*W = 96 is NOT a multiple of 128.
    x2 = jax.random.normal(jax.random.PRNGKey(0), (2, 4, 8, 12), dtype=jnp.float32)
    out2 = jax.block_until_ready(sigmoid_on_last_channel(x2))
    ref2 = _reference(x2)
    assert out2.shape == (2, 1, 8, 12), out2.shape
    assert jnp.allclose(out2, ref2, atol=1e-6, rtol=1e-6), "fallback mismatch"

    print("KERNEL_OK")
</pallas_src>

<mosaic_0001>
module attributes {stable_mosaic.version = 11 : i64} {
  func.func @_sigmoid_scale_kernel(%arg0: i32, %arg1: i32, %arg2: memref<1x2x128xf32, #tpu.memory_space<vmem>>, %arg3: memref<1x2x128xf32, #tpu.memory_space<vmem>>) attributes {dimension_semantics = [#tpu.dimension_semantics<parallel>, #tpu.dimension_semantics<parallel>], iteration_bounds = array<i64: 2, 1>, scalar_prefetch = 0 : i64, scratch_operands = 0 : i64, tpu.core_type = #tpu.core_type<tc>, window_params = [{transform_indices = @transform_0, window_bounds = array<i64: 1, 2, 128>}, {transform_indices = @transform_1, window_bounds = array<i64: 1, 2, 128>}]} {
    %c0 = arith.constant 0 : index
    %c0_0 = arith.constant 0 : index
    %c0_1 = arith.constant 0 : index
    %0 = vector.load %arg2[%c0, %c0_0, %c0_1] : memref<1x2x128xf32, #tpu.memory_space<vmem>>, vector<1x2x128xf32>
    %1 = arith.negf %0 : vector<1x2x128xf32>
    %2 = math.exp %1 : vector<1x2x128xf32>
    %cst = arith.constant 1.000000e+00 : f32
    %3 = vector.broadcast %cst : f32 to vector<1x2x128xf32>
    %4 = arith.addf %3, %2 : vector<1x2x128xf32>
    %5 = arith.divf %3, %4 : vector<1x2x128xf32>
    %cst_2 = arith.constant 3.000000e-01 : f32
    %6 = vector.broadcast %cst_2 : f32 to vector<1x2x128xf32>
    %7 = arith.mulf %6, %5 : vector<1x2x128xf32>
    %c0_3 = arith.constant 0 : index
    %c0_4 = arith.constant 0 : index
    %c0_5 = arith.constant 0 : index
    %8 = vector.load %arg3[%c0_3, %c0_4, %c0_5] : memref<1x2x128xf32, #tpu.memory_space<vmem>>, vector<1x2x128xf32>
    tpu.vector_store %arg3[%c0_3, %c0_4, %c0_5], %7 {strides = array<i32>} : memref<1x2x128xf32, #tpu.memory_space<vmem>>, vector<1x2x128xf32>,
    return
  }
  func.func @transform_0(%arg0: i32, %arg1: i32) -> (i32, i32, i32) {
    %c4_i32 = arith.constant 4 : i32
    %0 = arith.muli %arg0, %c4_i32 : i32
    %c3_i32 = arith.constant 3 : i32
    %1 = arith.addi %0, %c3_i32 : i32
    %c0_i32 = arith.constant 0 : i32
    %c0_i32_0 = arith.constant 0 : i32
    return %1, %arg1, %c0_i32 : i32, i32, i32
  }
  func.func @transform_1(%arg0: i32, %arg1: i32) -> (i32, i32, i32) {
    %c0_i32 = arith.constant 0 : i32
    %c0_i32_0 = arith.constant 0 : i32
    return %arg0, %arg1, %c0_i32 : i32, i32, i32
  }
}

</mosaic_0001>

<bundles_post_ra>
// kernel: tpu_custom_call.1
= control target key start
LH: loop header
LB: loop body
LE: loop exit
PB: predicated region body
PF: predicated region fallthrough
CT: control target
= control target key end

     0   :  { %6 = vsyncpa [#allocation3], 0  ;;  %s720_s0 = inlined_call_operand.hbm [shape: f32[8,2,128], index: 0, kind: input, shape index: {}]   ;;  %s721_s1 = inlined_call_operand.hbm [shape: f32[2,2,128], index: 1, kind: output, shape index: {}]  }
   0x1   :  { %8 = vsyncpa [#allocation3 + $0x1], 0 }
   0x2   :  { %9 = vsyncpa [#allocation4], 0 }
   0x3   :  { %11 = vsyncpa [#allocation4 + $0x1], 0  ;;  %s522_s6 = smov 0   ;;  %s524_s7 = smov 0  }
   0x4   :  { %s526_s8 = smov 0   ;;  %s528_s9 = smov 0  }
   0x5   :  { %s530_s10 = smov 0   ;;  %s532_s11 = smov 0  }
   0x6   :  { %s534_s12 = smov 0   ;;  %s536_s13 = smov 0  }
   0x7   :  { %s538_s14 = smov 0  }
   0x8 LB: > { %s263_s15 = sadd.s32 4294967295, %s508_s14   ;;  %s264_s16 = sadd.s32 4294967294, %s508_s14   ;;  %s508_s14 = sphi %s538_s14, %s17_s14   ;;  %s504_s13 = sphi %s536_s13, %s740_s13   ;;  %s500_s12 = sphi %s534_s12, %s739_s12   ;;  %s496_s11 = sphi %s532_s11, %s738_s11   ;;  %s492_s10 = sphi %s530_s10, %s737_s10   ;;  %s488_s9 = sphi %s528_s9, %s736_s9   ;;  %s484_s8 = sphi %s526_s8, %s735_s8   ;;  %s480_s7 = sphi %s524_s7, %s734_s7   ;;  %s476_s6 = sphi %s522_s6, %s733_s6  }
   0x9   : > { %s29_s17 = sadd.s32 1, %s504_s13  ;;  %s265_s18 = sshll.u32 %s504_s13, 2 }
   0xa   : > { %p31_p0 = scmp.ge.s32.totalorder %s29_s17, 2  ;;  %s34_s19 = sadd.s32 3, %s265_s18 }
   0xb   : > { %s42_s20 = sadd.s32 1, %s496_s11  ;;  %p49_p1 = scmp.ne.s32.totalorder %s496_s11, %s492_s10 }
   0xc   : > { %s742_s17 = smov (%p31_p0, %s29_s17), 0  ;;  %p50_p2 = scmp.eq.s32.totalorder %s508_s14, 0 }
   0xd   : > { %p55_p3 = scmp.ne.s32.totalorder %s492_s10, %s488_s9  ;;  %s266_s21 = sshll.u32 %s742_s17, 2 }
   0xe   : > { %p56_p4 = scmp.eq.s32.totalorder %s263_s15, 0  ;;  %s36_s22 = sadd.s32 3, %s266_s21 }
   0xf   : > { %p577_p5 = por %p50_p2, %p49_p1  ;;  %s37_s24 = ssub.s32 %s34_s19, %s36_s22 }
  0x10   : > { %p581_p6 = por %p56_p4, %p55_p3  ;;  %p40_p7 = scmp.eq.s32.totalorder %s37_s24, 0 }
  0x11   : > { %s65_s26 = ssub.s32 %s504_s13, %s742_s17  ;;  %s70_s27 = sadd.s32 1, %s484_s8 }
  0x12   : > { %p68_p8 = scmp.eq.s32.totalorder %s65_s26, 0  ;;  %p80_p9 = scmp.ne.s32.totalorder %s484_s8, %s480_s7 }
  0x13   : > { %s589_s28 = scalar_select %p40_p7, %s496_s11, %s42_s20  }
  0x14   : > { %s592_s29 = scalar_select %p68_p8, %s484_s8, %s70_s27  }
  0x15   : > { %p81_p10 = scmp.eq.s32.totalorder %s263_s15, 1  ;;  %p86_p11 = scmp.ne.s32.totalorder %s480_s7, %s476_s6 }
  0x16   : > { %p87_p12 = scmp.eq.s32.totalorder %s264_s16, 1  ;;  %p293_p2 = scmp.lt.s32.totalorder %s508_s14, 2 }
  0x17   : > { %p598_p13 = por %p81_p10, %p80_p9  ;;  %s107_s3 = sand.u32 1, %s496_s11  }
  0x18   : > { %p603_p1 = por %p87_p12, %p86_p11  ;;  %s280_s4 = sshll.u32 %s504_s13, 7 }
  0x19   : > { %s725_s30 = scalar_select %p598_p13, 1, 0 }
  0x1a   : > { %s726_s2 = scalar_select %p603_p1, 1, 0 }
  0x1b   : > { %s269_s5 = sshll.u32 %s107_s3, 1  ;;  %s211_s15 = scalar_lea.hbm %s720_s0, %s280_s4 }
  0x1c   : > { %s613_s19 = scalar_lea.hbm %s211_s15, 96  ;;  %s111_s16 = scalar_lea.vmem [#allocation2], %s269_s5 }
  0x1d   : > { %s121_s20 = sshll.u32 %s111_s16, 4  ;;  %p619_p3 = pnand %p293_p2, %p577_p5  ;;  %s615_s20 = int_to_ptr.vmem [resolvable:$true] %s121_s20 }
  0x1e   : > { %s108_s22 = scalar_lea.sflag [#allocation3], %s107_s3  ;;  %s401_s24 = scalar_lea.hbm %s211_s15, 128 }
  0x1f   : > { %p372_p8 = scmp.ne.s32.totalorder %s613_s19, %s401_s24  ;;  %p373_p9 = pneg %p619_p3 }
  0x20   : > { %s376_s23 = scalar_lea.hbm %s720_s0, 256  ;;  %p377_p5 = scmp.lt.u32.totalorder %s613_s19, %s720_s0 }
  0x21   : > { %p374_p10 = pnand %p373_p9, %p372_p8  ;;  %p378_p12 = scmp.lt.u32.totalorder %s376_s23, %s401_s24 }
  0x22   : > { %p380_p0 = scmp.lt.u32.totalorder %s401_s24, %s613_s19 }
  0x23   : > { %p375_p11 = pneg %p374_p10  ;;  %p379_p2 = por %p378_p12, %p377_p5 }
  0x25   : > { %p381_p4 = por %p380_p0, %p379_p2 }
  0x27   : > { %p382_p7 = pnand %p381_p4, %p375_p11 }
  0x29   : > { %385 = shalt.err (!%p382_p7)
}
  0x2a   : > { %s386_s3 = scalar_lea.vmem %s615_s20, 32  ;;  %s510_s9 = smov [#allocation2]  }
  0x2b   : > { %p387_p8 = scmp.ne.s32.totalorder %s615_s20, %s386_s3  ;;  %s391_s18 = sshll.u32 %s510_s9, 4  ;;  %s392_s18 = int_to_ptr.vmem [resolvable:$false] %s391_s18 }
  0x2c   : > { %s393_s15 = scalar_lea.vmem %s392_s18, 64  ;;  %p394_p13 = scmp.lt.s32.totalorder %s615_s20, %s392_s18 }
  0x2d   : > { %p389_p10 = pnand %p387_p8, %p373_p9  ;;  %p395_p5 = scmp.lt.s32.totalorder %s393_s15, %s386_s3 }
  0x2f   : > { %p390_p1 = pneg %p389_p10  ;;  %p396_p12 = por %p395_p5, %p394_p13 }
  0x31   : > { %p397_p0 = pnand %p396_p12, %p390_p1 }
  0x33   : > { %400 = shalt.err (!%p397_p0)
}
  0x34   : > { %288 = dma.hbm_to_vmem [thread:$0]  (!%p619_p3), %s613_s19, 32, %s615_s20, %s108_s22  }
  0x35   : > { %p728_p4 = scmp.lt.s32.totalorder %s508_s14, 3  ;;  %p729_p7 = scmp.ge.s32.totalorder %s508_s14, 1 }
  0x37   : > { %p127_p9 = pnand %p729_p7, %p728_p4 }
  0x38   : > { %s132_s16 = sand.u32 (!%p127_p9), 1, %s492_s10  }
  0x39   : > { %130 = sbr.rel (%p127_p9) target bundleno = 108 (0x6c), region = 24  ;;  %s273_s24 = sshll.u32 (!%p127_p9), %s132_s16, 1 }
  0x3a   : > { %s133_s26 = scalar_lea.sflag (!%p127_p9), [#allocation3], %s132_s16  ;;  %s136_s27 = scalar_lea.vmem (!%p127_p9), [#allocation2], %s273_s24 }
  0x40   : > { %467 = dma.done.wait (%p581_p6), %s133_s26, 32  }
  0x41   : > { %469 = vsyncadd (%p581_p6), %s133_s26, 4294967264  ;;  %v157_v0 = vld [vmem:[%s136_s27] sm:$0x3]  ;;  %s152_s19 = sand.u32 1, %s480_s7   ;;  %s277_s23 = sshll.u32 %s500_s12, 5 }
  0x42   : > { %v275_v1 = vmul.f32 -1.442695, %v157_v0  ;;  %s274_s20 = sshll.u32 %s152_s19, 1  ;;  %s665_s5 = scalar_lea.hbm %s721_s1, %s277_s23 }
  0x43   : > { %s154_s21 = scalar_lea.vmem [#allocation5], %s274_s20  ;;  %s167_s3 = scalar_lea.sflag [#allocation4], %s152_s19 }
  0x44   : > { %367 = vpow2.f32 %v275_v1  ;;  %s181_s22 = sshll.u32 %s154_s21, 4  ;;  %p730_p13 = scmp.ne.s32.totalorder %s725_s30, 0  ;;  %s660_s22 = int_to_ptr.vmem [resolvable:$true] %s181_s22 }
  0x45   : > { %s402_s9 = scalar_lea.vmem %s660_s22, 32  ;;  %s511_s12 = smov [#allocation5]  }
  0x46   : > { %p403_p6 = scmp.ne.s32.totalorder %s660_s22, %s402_s9  ;;  %s406_s18 = sshll.u32 %s511_s12, 4  ;;  %s407_s18 = int_to_ptr.vmem [resolvable:$false] %s406_s18 }
  0x47   : > { %s408_s15 = scalar_lea.vmem %s407_s18, 64  ;;  %p409_p11 = scmp.lt.s32.totalorder %s660_s22, %s407_s18 }
  0x48   : > { %p404_p1 = pnand %p403_p6, %p730_p13  ;;  %p410_p2 = scmp.lt.s32.totalorder %s408_s15, %s402_s9 }
  0x4a   : > { %p405_p3 = pneg %p404_p1  ;;  %p411_p8 = por %p410_p2, %p409_p11 }
  0x4c   : > { %p412_p10 = pnand %p411_p8, %p405_p3 }
  0x4e   : > { %v368_v2 = vpop.eup %367 }
  0x4f   : > { %v161_v3 = vadd.f32 1.0, %v368_v2 }
  0x51   : > { %369 = vrcp.f32 %v161_v3 }
  0x5b   : > { %v370_v4 = vpop.eup %369 }
  0x5c   : > { %v164_v5 = vmul.f32 0.3, %v370_v4 }
  0x5e   : > { %165 = vst [vmem:[%s154_s21] sm:$0x3] %v164_v5 }
  0x5f   : > { %415 = shalt.err (!%p412_p10)
}
  0x60   : > { %s416_s16 = scalar_lea.hbm %s665_s5, 32  ;;  %s420_s27 = scalar_lea.hbm %s721_s1, 64 }
  0x61   : > { %p417_p5 = scmp.ne.s32.totalorder %s665_s5, %s416_s16  ;;  %p421_p4 = scmp.lt.u32.totalorder %s665_s5, %s721_s1 }
  0x62   : > { %p422_p7 = scmp.lt.u32.totalorder %s420_s27, %s416_s16  ;;  %p424_p6 = scmp.lt.u32.totalorder %s416_s16, %s665_s5 }
  0x63   : > { %p418_p12 = pnand %p417_p5, %p730_p13 }
  0x64   : > { %p423_p9 = por %p422_p7, %p421_p4 }
  0x65   : > { %p419_p0 = pneg %p418_p12 }
  0x66   : > { %p425_p1 = por %p424_p6, %p423_p9 }
  0x68   : > { %p426_p3 = pnand %p425_p1, %p419_p0 }
  0x6a   : > { %429 = shalt.err (!%p426_p3)
}
  0x6b   : > { %283 = dma.vmem_to_hbm [thread:$0]  (%p730_p13), %s660_s22, 32, %s665_s5, %s167_s3  }
  0x6c PF: > { %s193_s21 = sand.u32 1, %s476_s6   ;;  %p731_p11 = scmp.ne.s32.totalorder %s726_s2, 0 }
  0x6d   : > { %p732_p2 = scmp.ge.s32.totalorder %s508_s14, 2  ;;  %s194_s23 = scalar_lea.sflag [#allocation4], %s193_s21 }
  0x6f   : > { %p290_p8 = pnand %p732_p2, %p731_p11 }
  0x71   : > { %471 = dma.done.wait (!%p290_p8), %s194_s23, 32  }
  0x72   : > { %473 = vsyncadd (!%p290_p8), %s194_s23, 4294967264  ;;  %s17_s14 = sadd.s32 1, %s508_s14   ;;  %s733_s6 = smov %s480_s7 }
  0x73   : > { %p14_p10 = scmp.ge.s32.totalorder %s17_s14, 4   ;;  %s734_s7 = smov %s484_s8 }
  0x74   : > { %s735_s8 = smov %s592_s29  ;;  %s736_s9 = smov %s492_s10 }
  0x75   : > { %s737_s10 = smov %s496_s11  ;;  %s738_s11 = smov %s589_s28 }
  0x76   : > { %s739_s12 = smov %s504_s13  ;;  %s740_s13 = smov %s742_s17 }
  0x77   :  { %16 = sbr.rel (!%p14_p10) target bundleno = 8 (0x8), region = 69 }
  0x7e   :  { %199 = vsyncpa [#allocation3], 1 }
  0x7f   :  { %201 = vsyncpa [#allocation3 + $0x1], 1 }
  0x80   :  { %202 = vsyncpa [#allocation4], 1 }
  0x81   :  { %204 = vsyncpa [#allocation4 + $0x1], 1 }

</bundles_post_ra>
